<compile_context>
chip_gen: v7x
topology: tpu7x:2x2x1
jax: 0.10.0
libtpu: 0.0.40
codegen_flags: <defaults>
</compile_context>

<pallas_src>
import jax
import jax.numpy as jnp
from jax import lax
from jax.experimental import pallas as pl
from jax.experimental.pallas import tpu as pltpu
import numpy as np

OUT_LANES = 128   # lane-dense output width (one full vreg row); sliced to n_output outside


# ------------------------------- fused kernel -------------------------------

def _fused_kernel(x_ref, w1e_ref, w1o_ref, b1_ref, w2e_ref, w2o_ref, b2_ref,
                  wo_ref, bo_ref, o_ref):
    # conv1 (stride 2, pad 1) + MaxPool1d(2) folded into two matmuls + elementwise max.
    # relu(max(a,b) + bias) == max(relu(a + bias), relu(b + bias))  (relu monotone).
    x = x_ref[...]                                                     # (nb, L)
    y1 = jnp.maximum(
        jnp.dot(x, w1e_ref[...], preferred_element_type=jnp.float32),
        jnp.dot(x, w1o_ref[...], preferred_element_type=jnp.float32))
    h1 = jnp.maximum(y1 + b1_ref[...], 0.0)                            # (nb, L2*C1)

    # conv2 (stride 2, pad 1) + second MaxPool1d(2), same trick.
    y2 = jnp.maximum(
        jnp.dot(h1, w2e_ref[...], preferred_element_type=jnp.float32),
        jnp.dot(h1, w2o_ref[...], preferred_element_type=jnp.float32))
    h2 = jnp.maximum(y2 + b2_ref[...], 0.0)                            # (nb, L4*C2)

    # flatten + Linear (torch flatten order folded into wo); lane-dense (nb, 128) store.
    o_ref[...] = (jnp.dot(h2, wo_ref[...], preferred_element_type=jnp.float32)
                  + bo_ref[...])


# ------------------------------- JAX wrapper --------------------------------

def _one_hot_taps(t_in, t_out, offset):
    """M[k, j, t] = 1 iff j == 4*t + k + offset and 0 <= j < t_in (numpy constant)."""
    m = np.zeros((3, t_in, t_out), np.float32)
    for k in range(3):
        j = 4 * np.arange(t_out) + k + offset
        valid = (j >= 0) & (j < t_in)
        m[k, j[valid], np.arange(t_out)[valid]] = 1.0
    return m


def cnn1d_forward(x, params, *, batch_block=None):
    """x: (N, 1, L) float32, PyTorch NCW layout. Returns (N, n_output) float32."""
    w1, b1, w2, b2, wo, bo = params
    N, c_in, L = x.shape
    assert c_in == 1
    assert L % 16 == 0, "two stride-2 convs + two maxpools require L % 16 == 0"
    C1, C2, n_out = w1.shape[0], w2.shape[0], wo.shape[0]
    L2, L4 = L // 4, L // 16           # time lengths after pool1 / pool2
    assert wo.shape[1] == C2 * L4
    f32 = jnp.float32

    # ---- batch blocking: big lane-dense blocks, but >= 2 grid steps when N allows ----
    if batch_block is None:
        nb = N
        for cand in (2048, 1024, 512, 256, 128, 64, 32, 16, 8):
            if N % cand == 0 and N // cand >= 2:
                nb = cand
                break
    else:
        nb = batch_block
    assert N % nb == 0 and (nb == N or nb % 8 == 0)
    grid = (N // nb,)

    # ---- constant tap-selection tensors (numpy, built once per trace) ----
    # conv1 output at t1 uses x[2*t1 - 1 + k]; pool1 pairs t1 = 2*t2 (even) / 2*t2+1 (odd)
    e1 = _one_hot_taps(L, L2, -1)      # even partner:  j = 4*t2 + k - 1
    o1 = _one_hot_taps(L, L2, +1)      # odd  partner:  j = 4*t2 + k + 1
    # conv2 output at t3 uses h1[:, 2*t3 - 1 + k]; pool2 pairs t3 = 2*t4 / 2*t4+1
    e2 = _one_hot_taps(L2, L4, -1)
    o2 = _one_hot_taps(L2, L4, +1)

    # ---- conv1 folded into (L, L2*C1) matrices; h1 lane = t2*C1 + c ----
    w1k = w1[:, 0, :]                                                   # (C1, 3)
    w1e = jnp.einsum('kjt,ck->jtc', e1, w1k).reshape(L, L2 * C1)
    w1o = jnp.einsum('kjt,ck->jtc', o1, w1k).reshape(L, L2 * C1)
    b1b = jnp.tile(b1, L2).reshape(1, L2 * C1)

    # ---- conv2 folded into (L2*C1, L4*C2) matrices; h2 lane = t4*C2 + c ----
    w2e = jnp.einsum('kst,ock->scto', e2, w2).reshape(L2 * C1, L4 * C2)
    w2o = jnp.einsum('kst,ock->scto', o2, w2).reshape(L2 * C1, L4 * C2)
    b2b = jnp.tile(b2, L4).reshape(1, L4 * C2)

    # ---- linear: torch flatten order is c*L4 + t4, our lanes are t4*C2 + c ----
    wo_r = jnp.transpose(wo.reshape(n_out, C2, L4), (2, 1, 0)).reshape(L4 * C2, n_out)
    wo_p = jnp.zeros((L4 * C2, OUT_LANES), f32).at[:, :n_out].set(wo_r)
    bo_p = jnp.zeros((1, OUT_LANES), f32).at[0, :n_out].set(bo)

    x2d = x[:, 0, :].astype(f32)                                        # (N, L) lane-dense

    out_pad = pl.pallas_call(
        _fused_kernel,
        out_shape=jax.ShapeDtypeStruct((N, OUT_LANES), f32),
        grid_spec=pltpu.PrefetchScalarGridSpec(
            num_scalar_prefetch=0,
            grid=grid,
            in_specs=[
                pl.BlockSpec((nb, L), lambda i: (i, 0)),              # x (only per-step DMA)
                pl.BlockSpec((L, L2 * C1), lambda i: (0, 0)),         # w1 even
                pl.BlockSpec((L, L2 * C1), lambda i: (0, 0)),         # w1 odd
                pl.BlockSpec((1, L2 * C1), lambda i: (0, 0)),         # b1 (tiled per t2)
                pl.BlockSpec((L2 * C1, L4 * C2), lambda i: (0, 0)),   # w2 even
                pl.BlockSpec((L2 * C1, L4 * C2), lambda i: (0, 0)),   # w2 odd
                pl.BlockSpec((1, L4 * C2), lambda i: (0, 0)),         # b2 (tiled per t4)
                pl.BlockSpec((L4 * C2, OUT_LANES), lambda i: (0, 0)), # linear weight
                pl.BlockSpec((1, OUT_LANES), lambda i: (0, 0)),       # linear bias
            ],
            out_specs=pl.BlockSpec((nb, OUT_LANES), lambda i: (i, 0)),
        ),
        compiler_params=pltpu.CompilerParams(
            dimension_semantics=("parallel",)),
    )(x2d, w1e, w1o, b1b, w2e, w2o, b2b, wo_p, bo_p)

    return out_pad[:, :n_out]


# ----------------------------- pure-JAX reference ----------------------------

def cnn1d_reference(x, params):
    w1, b1, w2, b2, wo, bo = params
    dn = lax.conv_dimension_numbers(x.shape, w1.shape, ('NCH', 'OIH', 'NCH'))
    y = lax.conv_general_dilated(x, w1, (2,), [(1, 1)], dimension_numbers=dn)
    y = jax.nn.relu(y + b1[None, :, None])
    y = lax.reduce_window(y, -jnp.inf, lax.max, (1, 1, 2), (1, 1, 2), 'VALID')
    dn2 = lax.conv_dimension_numbers(y.shape, w2.shape, ('NCH', 'OIH', 'NCH'))
    y = lax.conv_general_dilated(y, w2, (2,), [(1, 1)], dimension_numbers=dn2)
    y = jax.nn.relu(y + b2[None, :, None])
    y = lax.reduce_window(y, -jnp.inf, lax.max, (1, 1, 2), (1, 1, 2), 'VALID')
    flat = y.reshape(y.shape[0], -1)
    return flat @ wo.T + bo[None, :]


# ------------------------------------ main -----------------------------------

if __name__ == "__main__":
    N = 16            # batch (small, but enough for a 2-step pipelined grid)
    L = 64            # n_feature (input sequence length)
    n_out = 3         # n_output
    out_dim = 8 * (L // 16)   # 8 channels * L/16 time steps after 2 stride-2 convs + 2 pools

    key = jax.random.PRNGKey(0)
    ks = jax.random.split(key, 7)
    x  = jax.random.normal(ks[0], (N, 1, L), jnp.float32)
    w1 = jax.random.normal(ks[1], (8, 1, 3), jnp.float32) * 0.3     # Conv1d(1, 8, 3, s=2, p=1)
    b1 = jax.random.normal(ks[2], (8,), jnp.float32) * 0.1
    w2 = jax.random.normal(ks[3], (8, 8, 3), jnp.float32) * 0.2     # Conv1d(8, 8, 3, s=2, p=1)
    b2 = jax.random.normal(ks[4], (8,), jnp.float32) * 0.1
    wo = jax.random.normal(ks[5], (n_out, out_dim), jnp.float32) * 0.1   # Linear(out_dim, n_out)
    bo = jax.random.normal(ks[6], (n_out,), jnp.float32) * 0.1
    params = (w1, b1, w2, b2, wo, bo)

    fwd = jax.jit(lambda xx, pp: cnn1d_forward(xx, pp, batch_block=8))   # grid = (2,)
    out = jax.block_until_ready(fwd(x, params))

    ref = cnn1d_reference(x, params)
    np.testing.assert_allclose(np.asarray(out), np.asarray(ref), rtol=1e-4, atol=1e-4)

    print("KERNEL_OK")
</pallas_src>

<mosaic_0001>
module attributes {stable_mosaic.version = 11 : i64} {
  func.func @_fused_kernel(%arg0: i32, %arg1: memref<8x64xf32, #tpu.memory_space<vmem>>, %arg2: memref<64x128xf32, #tpu.memory_space<vmem>>, %arg3: memref<64x128xf32, #tpu.memory_space<vmem>>, %arg4: memref<1x128xf32, #tpu.memory_space<vmem>>, %arg5: memref<128x32xf32, #tpu.memory_space<vmem>>, %arg6: memref<128x32xf32, #tpu.memory_space<vmem>>, %arg7: memref<1x32xf32, #tpu.memory_space<vmem>>, %arg8: memref<32x128xf32, #tpu.memory_space<vmem>>, %arg9: memref<1x128xf32, #tpu.memory_space<vmem>>, %arg10: memref<8x128xf32, #tpu.memory_space<vmem>>) attributes {dimension_semantics = [#tpu.dimension_semantics<parallel>], iteration_bounds = array<i64: 2>, scalar_prefetch = 0 : i64, scratch_operands = 0 : i64, tpu.core_type = #tpu.core_type<tc>, window_params = [{transform_indices = @transform_0, window_bounds = array<i64: 8, 64>}, {pipeline_mode = #tpu.pipeline_mode<synchronous>, transform_indices = @transform_1, window_bounds = array<i64: 64, 128>}, {pipeline_mode = #tpu.pipeline_mode<synchronous>, transform_indices = @transform_2, window_bounds = array<i64: 64, 128>}, {pipeline_mode = #tpu.pipeline_mode<synchronous>, transform_indices = @transform_3, window_bounds = array<i64: 1, 128>}, {pipeline_mode = #tpu.pipeline_mode<synchronous>, transform_indices = @transform_4, window_bounds = array<i64: 128, 32>}, {pipeline_mode = #tpu.pipeline_mode<synchronous>, transform_indices = @transform_5, window_bounds = array<i64: 128, 32>}, {pipeline_mode = #tpu.pipeline_mode<synchronous>, transform_indices = @transform_6, window_bounds = array<i64: 1, 32>}, {pipeline_mode = #tpu.pipeline_mode<synchronous>, transform_indices = @transform_7, window_bounds = array<i64: 32, 128>}, {pipeline_mode = #tpu.pipeline_mode<synchronous>, transform_indices = @transform_8, window_bounds = array<i64: 1, 128>}, {transform_indices = @transform_9, window_bounds = array<i64: 8, 128>}]} {
    %c0 = arith.constant 0 : index
    %c0_0 = arith.constant 0 : index
    %0 = vector.load %arg1[%c0, %c0_0] : memref<8x64xf32, #tpu.memory_space<vmem>>, vector<8x64xf32>
    %c0_1 = arith.constant 0 : index
    %c0_2 = arith.constant 0 : index
    %1 = vector.load %arg2[%c0_1, %c0_2] : memref<64x128xf32, #tpu.memory_space<vmem>>, vector<64x128xf32>
    %cst = arith.constant dense<0.000000e+00> : vector<8x128xf32>
    %2 = tpu.matmul %0, %1, %cst {dimension_numbers = #tpu.dot_dimension_numbers<[1], [0], [0], [1], [0, 0, 1, 1], [], []>} : vector<8x64xf32>, vector<64x128xf32>, vector<8x128xf32> -> vector<8x128xf32>
    %c0_3 = arith.constant 0 : index
    %c0_4 = arith.constant 0 : index
    %3 = vector.load %arg3[%c0_3, %c0_4] : memref<64x128xf32, #tpu.memory_space<vmem>>, vector<64x128xf32>
    %cst_5 = arith.constant dense<0.000000e+00> : vector<8x128xf32>
    %4 = tpu.matmul %0, %3, %cst_5 {dimension_numbers = #tpu.dot_dimension_numbers<[1], [0], [0], [1], [0, 0, 1, 1], [], []>} : vector<8x64xf32>, vector<64x128xf32>, vector<8x128xf32> -> vector<8x128xf32>
    %5 = arith.maximumf %2, %4 : vector<8x128xf32>
    %c0_6 = arith.constant 0 : index
    %c0_7 = arith.constant 0 : index
    %6 = vector.load %arg4[%c0_6, %c0_7] : memref<1x128xf32, #tpu.memory_space<vmem>>, vector<1x128xf32>
    %7 = vector.broadcast %6 : vector<1x128xf32> to vector<8x128xf32>
    %8 = arith.addf %5, %7 : vector<8x128xf32>
    %cst_8 = arith.constant 0.000000e+00 : f32
    %9 = vector.broadcast %cst_8 : f32 to vector<8x128xf32>
    %10 = arith.maximumf %8, %9 : vector<8x128xf32>
    %c0_9 = arith.constant 0 : index
    %c0_10 = arith.constant 0 : index
    %11 = vector.load %arg5[%c0_9, %c0_10] : memref<128x32xf32, #tpu.memory_space<vmem>>, vector<128x32xf32>
    %cst_11 = arith.constant dense<0.000000e+00> : vector<8x32xf32>
    %12 = tpu.matmul %10, %11, %cst_11 {dimension_numbers = #tpu.dot_dimension_numbers<[1], [0], [0], [1], [0, 0, 1, 1], [], []>} : vector<8x128xf32>, vector<128x32xf32>, vector<8x32xf32> -> vector<8x32xf32>
    %c0_12 = arith.constant 0 : index
    %c0_13 = arith.constant 0 : index
    %13 = vector.load %arg6[%c0_12, %c0_13] : memref<128x32xf32, #tpu.memory_space<vmem>>, vector<128x32xf32>
    %cst_14 = arith.constant dense<0.000000e+00> : vector<8x32xf32>
    %14 = tpu.matmul %10, %13, %cst_14 {dimension_numbers = #tpu.dot_dimension_numbers<[1], [0], [0], [1], [0, 0, 1, 1], [], []>} : vector<8x128xf32>, vector<128x32xf32>, vector<8x32xf32> -> vector<8x32xf32>
    %15 = arith.maximumf %12, %14 : vector<8x32xf32>
    %c0_15 = arith.constant 0 : index
    %c0_16 = arith.constant 0 : index
    %16 = vector.load %arg7[%c0_15, %c0_16] : memref<1x32xf32, #tpu.memory_space<vmem>>, vector<1x32xf32>
    %17 = vector.broadcast %16 : vector<1x32xf32> to vector<8x32xf32>
    %18 = arith.addf %15, %17 : vector<8x32xf32>
    %cst_17 = arith.constant 0.000000e+00 : f32
    %19 = vector.broadcast %cst_17 : f32 to vector<8x32xf32>
    %20 = arith.maximumf %18, %19 : vector<8x32xf32>
    %c0_18 = arith.constant 0 : index
    %c0_19 = arith.constant 0 : index
    %21 = vector.load %arg8[%c0_18, %c0_19] : memref<32x128xf32, #tpu.memory_space<vmem>>, vector<32x128xf32>
    %cst_20 = arith.constant dense<0.000000e+00> : vector<8x128xf32>
    %22 = tpu.matmul %20, %21, %cst_20 {dimension_numbers = #tpu.dot_dimension_numbers<[1], [0], [0], [1], [0, 0, 1, 1], [], []>} : vector<8x32xf32>, vector<32x128xf32>, vector<8x128xf32> -> vector<8x128xf32>
    %c0_21 = arith.constant 0 : index
    %c0_22 = arith.constant 0 : index
    %23 = vector.load %arg9[%c0_21, %c0_22] : memref<1x128xf32, #tpu.memory_space<vmem>>, vector<1x128xf32>
    %24 = vector.broadcast %23 : vector<1x128xf32> to vector<8x128xf32>
    %25 = arith.addf %22, %24 : vector<8x128xf32>
    %c0_23 = arith.constant 0 : index
    %c0_24 = arith.constant 0 : index
    %26 = vector.load %arg10[%c0_23, %c0_24] : memref<8x128xf32, #tpu.memory_space<vmem>>, vector<8x128xf32>
    tpu.vector_store %arg10[%c0_23, %c0_24], %25 {strides = array<i32>} : memref<8x128xf32, #tpu.memory_space<vmem>>, vector<8x128xf32>,
    return
  }
  func.func @transform_0(%arg0: i32) -> (i32, i32) {
    %c0_i32 = arith.constant 0 : i32
    %c0_i32_0 = arith.constant 0 : i32
    return %arg0, %c0_i32 : i32, i32
  }
  func.func @transform_1(%arg0: i32) -> (i32, i32) {
    %c0_i32 = arith.constant 0 : i32
    %c0_i32_0 = arith.constant 0 : i32
    %c0_i32_1 = arith.constant 0 : i32
    return %c0_i32, %c0_i32_0 : i32, i32
  }
  func.func @transform_2(%arg0: i32) -> (i32, i32) {
    %c0_i32 = arith.constant 0 : i32
    %c0_i32_0 = arith.constant 0 : i32
    %c0_i32_1 = arith.constant 0 : i32
    return %c0_i32, %c0_i32_0 : i32, i32
  }
  func.func @transform_3(%arg0: i32) -> (i32, i32) {
    %c0_i32 = arith.constant 0 : i32
    %c0_i32_0 = arith.constant 0 : i32
    %c0_i32_1 = arith.constant 0 : i32
    return %c0_i32, %c0_i32_0 : i32, i32
  }
  func.func @transform_4(%arg0: i32) -> (i32, i32) {
    %c0_i32 = arith.constant 0 : i32
    %c0_i32_0 = arith.constant 0 : i32
    %c0_i32_1 = arith.constant 0 : i32
    return %c0_i32, %c0_i32_0 : i32, i32
  }
  func.func @transform_5(%arg0: i32) -> (i32, i32) {
    %c0_i32 = arith.constant 0 : i32
    %c0_i32_0 = arith.constant 0 : i32
    %c0_i32_1 = arith.constant 0 : i32
    return %c0_i32, %c0_i32_0 : i32, i32
  }
  func.func @transform_6(%arg0: i32) -> (i32, i32) {
    %c0_i32 = arith.constant 0 : i32
    %c0_i32_0 = arith.constant 0 : i32
    %c0_i32_1 = arith.constant 0 : i32
    return %c0_i32, %c0_i32_0 : i32, i32
  }
  func.func @transform_7(%arg0: i32) -> (i32, i32) {
    %c0_i32 = arith.constant 0 : i32
    %c0_i32_0 = arith.constant 0 : i32
    %c0_i32_1 = arith.constant 0 : i32
    return %c0_i32, %c0_i32_0 : i32, i32
  }
  func.func @transform_8(%arg0: i32) -> (i32, i32) {
    %c0_i32 = arith.constant 0 : i32
    %c0_i32_0 = arith.constant 0 : i32
    %c0_i32_1 = arith.constant 0 : i32
    return %c0_i32, %c0_i32_0 : i32, i32
  }
  func.func @transform_9(%arg0: i32) -> (i32, i32) {
    %c0_i32 = arith.constant 0 : i32
    %c0_i32_0 = arith.constant 0 : i32
    return %arg0, %c0_i32 : i32, i32
  }
}

</mosaic_0001>

<bundles_post_ra>
// kernel: tile.13
= control target key start
LH: loop header
LB: loop body
LE: loop exit
PB: predicated region body
PF: predicated region fallthrough
CT: control target
= control target key end

     0   :  { %s28_s0 = inlined_call_operand.vmem [shape: f32[8], index: 0, kind: input, shape index: {}]   ;;  %s29_s1 = inlined_call_operand.vmem [shape: f32[16,8], index: 1, kind: output, shape index: {}]  }
   0x1   :  { %v4_v0 = vld [vmem:[%s28_s0] ss:$0 sm:$0xff] }
   0x2   :  { %5 = vst [vmem:[%s29_s1] sm:$0xff] %v4_v0  ;;  %8 = vst [vmem:[%s29_s1 + $0x8] sm:$0xff] %v4_v0 }

// kernel: tile.14
= control target key start
LH: loop header
LB: loop body
LE: loop exit
PB: predicated region body
PF: predicated region fallthrough
CT: control target
= control target key end

     0   :  { %s131_s10 = smov 120   ;;  %s132_s11 = smov 104   ;;  %vm3_vm0 = vcmask 64512   ;;  %vm9_vm1 = vcmask 1048512   ;;  %vm15_vm2 = vcmask 982912   ;;  %vm21_vm3 = vcmask 917312   ;;  %s207_s0 = inlined_call_operand.vmem [shape: f32[16,8], index: 0, kind: input, shape index: {}]   ;;  %s208_s1 = inlined_call_operand.vmem [shape: f32[1,128], index: 1, kind: output, shape index: {}]  }
   0x1   :  { %v101_v0 = vld [vmem:[%s207_s0 + $0xf] sm:$0x1]   ;;  %v103_v1 = vld [vmem:[%s207_s0 + $0xd] sm:$0x1]   ;;  %v102_v2 = vld [vmem:[%s207_s0 + $0xe] sm:$0x1]  }
   0x2   :  { %7 = vrot.lane.b32.xlu0 %v101_v0, %s131_s10  ;;  %19 = vrot.lane.b32.xlu1 %v103_v1, %s132_s11  ;;  %v104_v3 = vld [vmem:[%s207_s0 + $0xc] sm:$0x1]   ;;  %s133_s16 = smov 112   ;;  %s134_s17 = smov 96   ;;  %v105_v4 = vld [vmem:[%s207_s0 + $0xb] sm:$0x1]  }
   0x3   :  { %v106_v5 = vld [vmem:[%s207_s0 + $0xa] sm:$0x1]   ;;  %v2_v6 = vld [vmem:[%s207_s0] sm:$0x1]   ;;  %s135_s24 = smov 88   ;;  %s136_s25 = smov 80  }
   0x4   :  { %4 = vst.msk [vmem:[#allocation0] sm:$0x1] %vm3_vm0, %v2_v6   ;;  %v107_v7 = vld [vmem:[%s207_s0 + $0x9] sm:$0x1]   ;;  %v108_v8 = vld [vmem:[%s207_s0 + $0x8] sm:$0x1]  }
   0x5   :  { %s137_s30 = smov 72   ;;  %s138_s2 = smov 64   ;;  %v109_v9 = vld [vmem:[%s207_s0 + $0x7] sm:$0x1]   ;;  %v110_v10 = vld [vmem:[%s207_s0 + $0x6] sm:$0x1]  }
   0x6   :  { %13 = vrot.lane.b32.xlu0 %v102_v2, %s133_s16  ;;  %25 = vrot.lane.b32.xlu1 %v104_v3, %s134_s17  ;;  %s139_s7 = smov 56   ;;  %s140_s8 = smov 48   ;;  %v111_v11 = vld [vmem:[%s207_s0 + $0x5] sm:$0x1]   ;;  %v112_v12 = vld [vmem:[%s207_s0 + $0x4] sm:$0x1]  }
   0x7   :  { %s141_s13 = smov 40   ;;  %s142_s14 = smov 32   ;;  %v113_v13 = vld [vmem:[%s207_s0 + $0x3] sm:$0x1]   ;;  %v114_v14 = vld [vmem:[%s207_s0 + $0x2] sm:$0x1]  }
   0x8   :  { %s143_s19 = smov 24   ;;  %s144_s20 = smov 16   ;;  %v115_v15 = vld [vmem:[%s207_s0 + $0x1] sm:$0x1]   ;;  %vm27_vm4 = vcmask 851712   ;;  %vm33_vm5 = vcmask 786112  }
   0x9   :  { %s145_s0 = smov 8   ;;  %vm39_vm6 = vcmask 720512   ;;  %vm45_vm7 = vcmask 654912   ;;  %vm51_vm8 = vcmask 589312   ;;  %vm57_vm9 = vcmask 523712  }
   0xa   :  { %31 = vrot.lane.b32.xlu0 %v105_v4, %s135_s24  ;;  %37 = vrot.lane.b32.xlu1 %v106_v5, %s136_s25  ;;  %vm63_vm10 = vcmask 458112   ;;  %vm69_vm11 = vcmask 392512   ;;  %vm75_vm12 = vcmask 326912   ;;  %vm81_vm13 = vcmask 261312  }
   0xb   :  { %vm87_vm14 = vcmask 195712   ;;  %vm93_vm15 = vcmask 130112  }
   0xe   :  { %43 = vrot.lane.b32.xlu0 %v107_v7, %s137_s30  ;;  %49 = vrot.lane.b32.xlu1 %v108_v8, %s138_s2 }
  0x12   :  { %55 = vrot.lane.b32.xlu0 %v109_v9, %s139_s7  ;;  %61 = vrot.lane.b32.xlu1 %v110_v10, %s140_s8 }
  0x16   :  { %67 = vrot.lane.b32.xlu0 %v111_v11, %s141_s13  ;;  %73 = vrot.lane.b32.xlu1 %v112_v12, %s142_s14 }
  0x1a   :  { %79 = vrot.lane.b32.xlu0 %v113_v13, %s143_s19  ;;  %85 = vrot.lane.b32.xlu1 %v114_v14, %s144_s20 }
  0x1e   :  { %91 = vrot.lane.b32.xlu0 %v115_v15, %s145_s0 }
  0x74   :  { %v8_v16 = vpop.permute.xlu0 %7   ;;  %v20_v17 = vpop.permute.xlu1 %19  }
  0x75   :  { %10 = vst.msk [vmem:[#allocation0] sm:$0x1] %vm9_vm1, %v8_v16  }
  0x78   :  { %v14_v18 = vpop.permute.xlu0 %13   ;;  %v26_v19 = vpop.permute.xlu1 %25  }
  0x79   :  { %16 = vst.msk [vmem:[#allocation0] sm:$0x1] %vm15_vm2, %v14_v18  }
  0x7a   :  { %22 = vst.msk [vmem:[#allocation0] sm:$0x1] %vm21_vm3, %v20_v17  }
  0x7b   :  { %28 = vst.msk [vmem:[#allocation0] sm:$0x1] %vm27_vm4, %v26_v19  }
  0x7c   :  { %v32_v20 = vpop.permute.xlu0 %31   ;;  %v38_v21 = vpop.permute.xlu1 %37  }
  0x7d   :  { %34 = vst.msk [vmem:[#allocation0] sm:$0x1] %vm33_vm5, %v32_v20  }
  0x7e   :  { %40 = vst.msk [vmem:[#allocation0] sm:$0x1] %vm39_vm6, %v38_v21  }
  0x80   :  { %v44_v22 = vpop.permute.xlu0 %43   ;;  %v50_v23 = vpop.permute.xlu1 %49  }
  0x81   :  { %46 = vst.msk [vmem:[#allocation0] sm:$0x1] %vm45_vm7, %v44_v22  }
  0x82   :  { %52 = vst.msk [vmem:[#allocation0] sm:$0x1] %vm51_vm8, %v50_v23  }
  0x84   :  { %v56_v24 = vpop.permute.xlu0 %55   ;;  %v62_v25 = vpop.permute.xlu1 %61  }
  0x85   :  { %58 = vst.msk [vmem:[#allocation0] sm:$0x1] %vm57_vm9, %v56_v24  }
  0x86   :  { %64 = vst.msk [vmem:[#allocation0] sm:$0x1] %vm63_vm10, %v62_v25  }
  0x88   :  { %v68_v26 = vpop.permute.xlu0 %67   ;;  %v74_v27 = vpop.permute.xlu1 %73  }
  0x89   :  { %70 = vst.msk [vmem:[#allocation0] sm:$0x1] %vm69_vm11, %v68_v26  }
  0x8a   :  { %76 = vst.msk [vmem:[#allocation0] sm:$0x1] %vm75_vm12, %v74_v27  }
  0x8c   :  { %v80_v28 = vpop.permute.xlu0 %79   ;;  %v86_v29 = vpop.permute.xlu1 %85  }
  0x8d   :  { %82 = vst.msk [vmem:[#allocation0] sm:$0x1] %vm81_vm13, %v80_v28  }
  0x8e   :  { %88 = vst.msk [vmem:[#allocation0] sm:$0x1] %vm87_vm14, %v86_v29  }
  0x90   :  { %v92_v30 = vpop.permute.xlu0 %91  }
  0x91   :  { %94 = vst.msk [vmem:[#allocation0] sm:$0x1] %vm93_vm15, %v92_v30  }
  0x98   :  { %v98_v31 = vld [vmem:[#allocation0] sm:$0x1] }
  0x99   :  { %100 = vst [vmem:[%s208_s1] sm:$0x1] %v98_v31 }

// kernel: tile.18
= control target key start
LH: loop header
LB: loop body
LE: loop exit
PB: predicated region body
PF: predicated region fallthrough
CT: control target
= control target key end

     0   :  { %s22_s0 = inlined_call_operand.vmem [shape: f32[8], index: 0, kind: input, shape index: {}]   ;;  %s23_s1 = inlined_call_operand.vmem [shape: f32[4,8], index: 1, kind: output, shape index: {}]  }
   0x1   :  { %v4_v0 = vld [vmem:[%s22_s0] ss:$0 sm:$0xff] }
   0x2   :  { %5 = vst [vmem:[%s23_s1] sm:$0xf] %v4_v0 }

// kernel: tile.19
= control target key start
LH: loop header
LB: loop body
LE: loop exit
PB: predicated region body
PF: predicated region fallthrough
CT: control target
= control target key end

     0   :  { %vm7_vm0 = vcmask 64512   ;;  %s37_s8 = smov 8   ;;  %s38_s9 = smov 16   ;;  %vm13_vm1 = vcmask 261312   ;;  %vm19_vm2 = vcmask 195712   ;;  %vm25_vm3 = vcmask 130112   ;;  %s55_s0 = inlined_call_operand.vmem [shape: f32[4,8], index: 0, kind: input, shape index: {}]   ;;  %s56_s1 = inlined_call_operand.vmem [shape: f32[1,32], index: 1, kind: output, shape index: {}]  }
   0x1   :  { %v4_v0 = vld [vmem:[%s55_s0] sm:$0xf]  ;;  %s36_s0 = smov 24  }
   0x2   :  { %5 = vst [vmem:[#allocation1] sm:$0xf] %v4_v0 }
   0x9   :  { %v10_v1 = vld [vmem:[#allocation1 + $0x3] sm:$0x1]   ;;  %v22_v2 = vld [vmem:[#allocation1 + $0x1] sm:$0x1]   ;;  %v6_v3 = vld [vmem:[#allocation1] sm:$0x1]  }
   0xa   :  { %11 = vrot.lane.b32.xlu0 %v10_v1, %s36_s0  ;;  %23 = vrot.lane.b32.xlu1 %v22_v2, %s37_s8  ;;  %v16_v4 = vld [vmem:[#allocation1 + $0x2] sm:$0x1]   ;;  %8 = vst.msk [vmem:[#allocation0] sm:$0x1] %vm7_vm0, %v6_v3  }
   0xe   :  { %17 = vrot.lane.b32.xlu0 %v16_v4, %s38_s9 }
  0x7c   :  { %v12_v5 = vpop.permute.xlu0 %11   ;;  %v24_v6 = vpop.permute.xlu1 %23  }
  0x7d   :  { %14 = vst.msk [vmem:[#allocation0] sm:$0x1] %vm13_vm1, %v12_v5  }
  0x80   :  { %v18_v7 = vpop.permute.xlu0 %17  }
  0x81   :  { %20 = vst.msk [vmem:[#allocation0] sm:$0x1] %vm19_vm2, %v18_v7  }
  0x82   :  { %26 = vst.msk [vmem:[#allocation0] sm:$0x1] %vm25_vm3, %v24_v6  }
  0x89   :  { %v30_v8 = vld [vmem:[#allocation0] sm:$0x1] }
  0x8a   :  { %32 = vst [vmem:[%s56_s1] sm:$0x1] %v30_v8 }

// kernel: _lambda_.1
= control target key start
LH: loop header
LB: loop body
LE: loop exit
PB: predicated region body
PF: predicated region fallthrough
CT: control target
= control target key end

     0   :  { %s1161_s30 = smov 0   ;;  %s1396_s0 = inlined_call_operand.vmem [shape: f32[16,64], index: 0, kind: input, shape index: {}]   ;;  %s1397_s1 = inlined_call_operand.vmem [shape: f32[64,128], index: 1, kind: input, shape index: {}]   ;;  %s1398_s2 = inlined_call_operand.vmem [shape: f32[64,128], index: 2, kind: input, shape index: {}]   ;;  %s1399_s3 = inlined_call_operand.vmem [shape: f32[1,128], index: 3, kind: input, shape index: {}]   ;;  %s1400_s4 = inlined_call_operand.vmem [shape: f32[128,32], index: 4, kind: input, shape index: {}]   ;;  %s1401_s5 = inlined_call_operand.vmem [shape: f32[128,32], index: 5, kind: input, shape index: {}]   ;;  %s1402_s6 = inlined_call_operand.vmem [shape: f32[1,32], index: 6, kind: input, shape index: {}]   ;;  %s1403_s7 = inlined_call_operand.vmem [shape: f32[32,128], index: 7, kind: input, shape index: {}]   ;;  %s1404_s8 = inlined_call_operand.vmem [shape: f32[1,128], index: 8, kind: input, shape index: {}]   ;;  %s1405_s9 = inlined_call_operand.vmem [shape: f32[16,128], index: 9, kind: output, shape index: {}]  }
   0x1 LB: > { %s820_s10 = sadd.s32 4294967295, %s1106_s30   ;;  %p824_p0 = scmp.ge.s32.totalorder %s1106_s30, 1  ;;  %s1106_s30 = sphi %s1161_s30, %s19_s30  }
   0x2   : > { %p286_p1 = scmp.lt.s32.totalorder %s1106_s30, 3 }
   0x4   : > { %p287_p2 = pnand %p824_p0, %p286_p1 }
   0x5   : > { %v329_v0 = vld [vmem:[%s1397_s1] sm:$0xff] (!%p287_p2)  ;;  %v330_v1 = vld [vmem:[%s1397_s1 + $0x8] sm:$0xff] (!%p287_p2)  ;;  %v1108_v3 = vmov (!%p287_p2), 0.0|0.0   ;;  %v331_v6 = vld [vmem:[%s1397_s1 + $0x10] sm:$0xff] (!%p287_p2)  ;;  %p1191_p3 = scmp.lt.s32.totalorder (!%p287_p2), %s820_s10, 1  ;;  %vm1109_vm0 = vmmov (!%p287_p2), 0  }
   0x6   : > { %290 = sbr.rel (%p287_p2) target bundleno = 675 (0x2a3), region = 56  ;;  %v411_v2 = vld [vmem:[%s1398_s2] sm:$0xff] (!%p287_p2)  ;;  %1011 = vmatprep.subr.bf16.mxu0 (!%p287_p2), %v1108_v3  ;;  %1023 = vmatprep.subr.bf16.mxu1 (!%p287_p2), %v1108_v3  ;;  %v1012_v4 = vpack.c.bf16 (!%p287_p2), %v330_v1, %v329_v0  ;;  %v412_v5 = vld [vmem:[%s1398_s2 + $0x8] sm:$0xff] (!%p287_p2)  ;;  %v332_v7 = vld [vmem:[%s1397_s1 + $0x18] sm:$0xff] (!%p287_p2)  ;;  %v1110_v11 = vmov (!%p287_p2), 0.0   ;;  %vm337_vm1 = vcmask (!%p287_p2), 523264  }
   0x7   : > { %v1024_v8 = vpack.c.bf16 (!%p287_p2), %v412_v5, %v411_v2  ;;  %v413_v9 = vld [vmem:[%s1398_s2 + $0x10] sm:$0xff] (!%p287_p2)  ;;  %v414_v10 = vld [vmem:[%s1398_s2 + $0x18] sm:$0xff] (!%p287_p2)  ;;  %908 = vmatprep.mubr.msk.f32.mxu0 (!%p287_p2), %vm1109_vm0, %v1110_v11  ;;  %927 = vmatprep.mubr.msk.f32.mxu1 (!%p287_p2), %vm1109_vm0, %v1110_v11  ;;  %v1015_v12 = vpack.c.bf16 (!%p287_p2), %v332_v7, %v331_v6  ;;  %v333_v14 = vld [vmem:[%s1397_s1 + $0x20] sm:$0xff] (!%p287_p2)  ;;  %vm692_vm2 = vcmask (!%p287_p2), 261120  }
   0x8   : > { %1013 = vmatpush3.bf16.msra.mxu0 (!%p287_p2), %v1012_v4  ;;  %v1027_v13 = vpack.c.bf16 (!%p287_p2), %v414_v10, %v413_v9  ;;  %v334_v15 = vld [vmem:[%s1397_s1 + $0x28] sm:$0xff] (!%p287_p2)  ;;  %v415_v16 = vld [vmem:[%s1398_s2 + $0x20] sm:$0xff] (!%p287_p2)  ;;  %v335_v20 = vld [vmem:[%s1397_s1 + $0x30] sm:$0xff] (!%p287_p2) }
   0x9   : > { %1025 = vmatpush3.bf16.msra.mxu1 (!%p287_p2), %v1024_v8  ;;  %1014 = vmatprep.subr.bf16.mxu0 (!%p287_p2), %v1108_v3  ;;  %v416_v17 = vld [vmem:[%s1398_s2 + $0x28] sm:$0xff] (!%p287_p2)  ;;  %v1018_v18 = vpack.c.bf16 (!%p287_p2), %v334_v15, %v333_v14  ;;  %v336_v21 = vld [vmem:[%s1397_s1 + $0x38] sm:$0xff] (!%p287_p2)  ;;  %v417_v22 = vld [vmem:[%s1398_s2 + $0x30] sm:$0xff] (!%p287_p2) }
   0xa   : > { %1026 = vmatprep.subr.bf16.mxu1 (!%p287_p2), %v1108_v3  ;;  %v1030_v19 = vpack.c.bf16 (!%p287_p2), %v416_v17, %v415_v16  ;;  %v418_v23 = vld [vmem:[%s1398_s2 + $0x38] sm:$0xff] (!%p287_p2)  ;;  %v1021_v24 = vpack.c.bf16 (!%p287_p2), %v336_v21, %v335_v20  ;;  %v499_v26 = vld [vmem:[%s1400_s4] sm:$0xff] (!%p287_p2)  ;;  %v500_v27 = vld [vmem:[%s1400_s4 + $0x8] sm:$0xff] (!%p287_p2) }
   0xb   : > { %v1033_v25 = vpack.c.bf16 (!%p287_p2), %v418_v23, %v417_v22  ;;  %v585_v28 = vld [vmem:[%s1401_s5] sm:$0xff] (!%p287_p2)  ;;  %v586_v29 = vld [vmem:[%s1401_s5 + $0x8] sm:$0xff] (!%p287_p2)  ;;  %v1036_v31 = vpack.c.bf16 (!%p287_p2), %v500_v27, %v499_v26  ;;  %v501_v33 = vld [vmem:[%s1400_s4 + $0x10] sm:$0xff] (!%p287_p2) }
   0xc   : > { %1016 = vmatpush3.bf16.msra.mxu0 (!%p287_p2), %v1015_v12  ;;  %v1060_v32 = vpack.c.bf16 (!%p287_p2), %v586_v29, %v585_v28  ;;  %v502_v34 = vld [vmem:[%s1400_s4 + $0x18] sm:$0xff] (!%p287_p2)  ;;  %v587_v35 = vld [vmem:[%s1401_s5 + $0x10] sm:$0xff] (!%p287_p2)  ;;  %v503_v39 = vld [vmem:[%s1400_s4 + $0x20] sm:$0xff] (!%p287_p2) }
   0xd   : > { %s1408_s10 = smov (!%p1191_p3, %s820_s10), 1  ;;  %1028 = vmatpush3.bf16.msra.mxu1 %v1027_v13  ;;  %1017 = vmatprep.subr.bf16.mxu0 %v1108_v3  ;;  %v588_v36 = vld [vmem:[%s1401_s5 + $0x18] sm:$0xff]  ;;  %v1039_v37 = vpack.c.bf16 %v502_v34, %v501_v33  ;;  %v504_v40 = vld [vmem:[%s1400_s4 + $0x28] sm:$0xff]  ;;  %v589_v41 = vld [vmem:[%s1401_s5 + $0x20] sm:$0xff] }
   0xe   : > { %1029 = vmatprep.subr.bf16.mxu1 %v1108_v3  ;;  %s825_s25 = sshll.u32 %s1408_s10, 3  ;;  %v1063_v38 = vpack.c.bf16 %v588_v36, %v587_v35  ;;  %v590_v42 = vld [vmem:[%s1401_s5 + $0x28] sm:$0xff]  ;;  %v1042_v43 = vpack.c.bf16 %v504_v40, %v503_v39  ;;  %v505_v45 = vld [vmem:[%s1400_s4 + $0x30] sm:$0xff]  ;;  %v506_v46 = vld [vmem:[%s1400_s4 + $0x38] sm:$0xff] }
   0xf   : > { %s323_s28 = scalar_lea.vmem %s1396_s0, %s825_s25  ;;  %v1066_v44 = vpack.c.bf16 %v590_v42, %v589_v41  ;;  %v591_v47 = vld [vmem:[%s1401_s5 + $0x30] sm:$0xff]  ;;  %v592_v48 = vld [vmem:[%s1401_s5 + $0x38] sm:$0xff]  ;;  %v1045_v49 = vpack.c.bf16 %v506_v46, %v505_v45  ;;  %v507_v51 = vld [vmem:[%s1400_s4 + $0x40] sm:$0xff]  ;;  %s327_s18 = scalar_lea.vmem %s1405_s9, %s825_s25 }
  0x10   : > { %1019 = vmatpush3.bf16.msra.mxu0 %v1018_v18  ;;  %v328_v30 = vld [vmem:[%s323_s28] sm:$0xff]  ;;  %v1069_v50 = vpack.c.bf16 %v592_v48, %v591_v47  ;;  %v508_v52 = vld [vmem:[%s1400_s4 + $0x48] sm:$0xff]  ;;  %v509_v57 = vld [vmem:[%s1400_s4 + $0x50] sm:$0xff] }
  0x11   : > { %1031 = vmatpush3.bf16.msra.mxu1 %v1030_v19  ;;  %1020 = vmatprep.subr.bf16.mxu0 %v1108_v3  ;;  %v593_v53 = vld [vmem:[%s1401_s5 + $0x40] sm:$0xff]  ;;  %v594_v54 = vld [vmem:[%s1401_s5 + $0x48] sm:$0xff]  ;;  %v1048_v55 = vpack.c.bf16 %v508_v52, %v507_v51  ;;  %v510_v58 = vld [vmem:[%s1400_s4 + $0x58] sm:$0xff] }
  0x12   : > { %1032 = vmatprep.subr.bf16.mxu1 %v1108_v3  ;;  %v1072_v56 = vpack.c.bf16 %v594_v54, %v593_v53  ;;  %v595_v59 = vld [vmem:[%s1401_s5 + $0x50] sm:$0xff]  ;;  %v596_v60 = vld [vmem:[%s1401_s5 + $0x58] sm:$0xff]  ;;  %v1051_v61 = vpack.c.bf16 %v510_v58, %v509_v57  ;;  %v511_v63 = vld [vmem:[%s1400_s4 + $0x60] sm:$0xff] }
  0x13   : > { %v1075_v62 = vpack.c.bf16 %v596_v60, %v595_v59  ;;  %v512_v0 = vld [vmem:[%s1400_s4 + $0x68] sm:$0xff]  ;;  %v597_v1 = vld [vmem:[%s1401_s5 + $0x60] sm:$0xff]  ;;  %v513_v6 = vld [vmem:[%s1400_s4 + $0x70] sm:$0xff] }
  0x14   : > { %1022 = vmatpush3.bf16.msra.mxu0 %v1021_v24  ;;  %v1054_v2 = vpack.c.bf16 %v512_v0, %v511_v63  ;;  %v598_v4 = vld [vmem:[%s1401_s5 + $0x68] sm:$0xff]  ;;  %v514_v7 = vld [vmem:[%s1400_s4 + $0x78] sm:$0xff]  ;;  %v599_v9 = vld [vmem:[%s1401_s5 + $0x70] sm:$0xff] }
  0x15   : > { %1034 = vmatpush3.bf16.msra.mxu1 %v1033_v25  ;;  %1035 = vmatprep.subr.bf16.mxu0 %v1108_v3  ;;  %v1078_v5 = vpack.c.bf16 %v598_v4, %v597_v1  ;;  %v1057_v8 = vpack.c.bf16 %v514_v7, %v513_v6  ;;  %v600_v10 = vld [vmem:[%s1401_s5 + $0x78] sm:$0xff]  ;;  %v829_v15 = vld [vmem:[%s1399_s3] ss:$0 sm:$0xff]  ;;  %v682_v22 = vld [vmem:[%s1403_s7 + $0x8] sm:$0xff] }
  0x16   : > { %1059 = vmatprep.subr.bf16.mxu1 %v1108_v3  ;;  %v1081_v12 = vpack.c.bf16 %v600_v10, %v599_v9  ;;  %v681_v21 = vld [vmem:[%s1403_s7] sm:$0xff]  ;;  %v683_v24 = vld [vmem:[%s1403_s7 + $0x10] sm:$0xff] }
  0x17   : > { %909 = vmatmul.mubr.msk.f32.vlgmr.msra.gmra.mrb[0].mxu0 %vm337_vm1, %v328_v30  ;;  %v1084_v23 = vpack.c.bf16 %v682_v22, %v681_v21  ;;  %v830_v28 = vld [vmem:[%s1402_s6] ss:$0 sm:$0xff] }
  0x18   : > { %928 = vmatmul.mubr.msk.f32.vlgmr.msra.gmra.mrb[0].mxu1 %vm337_vm1, %v328_v30  ;;  %1037 = vmatpush3.bf16.msra.mxu0 %v1036_v31  ;;  %v831_v33 = vld [vmem:[%s1404_s8] ss:$0 sm:$0xff] }
  0x19   : > { %1061 = vmatpush3.bf16.msra.mxu1 %v1060_v32  ;;  %1038 = vmatprep.subr.bf16.mxu0 %v1108_v3 }
  0x1a   : > { %1062 = vmatprep.subr.bf16.mxu1 %v1108_v3  ;;  %962 = vmatprep.mubr.msk.f32.mxu0 %vm1109_vm0, %v1110_v11 }
  0x1b   : > { %997 = vmatprep.mubr.msk.f32.mxu1 %vm1109_vm0, %v1110_v11 }
  0x1c   : > { %1040 = vmatpush3.bf16.msra.mxu0 %v1039_v37 }
  0x1d   : > { %1064 = vmatpush3.bf16.msra.mxu1 %v1063_v38  ;;  %1041 = vmatprep.subr.bf16.mxu0 %v1108_v3 }
  0x1e   : > { %1065 = vmatprep.subr.bf16.mxu1 %v1108_v3 }
  0x20   : > { %1043 = vmatpush3.bf16.msra.mxu0 %v1042_v43 }
  0x21   : > { %1067 = vmatpush3.bf16.msra.mxu1 %v1066_v44  ;;  %1044 = vmatprep.subr.bf16.mxu0 %v1108_v3 }
  0x22   : > { %1068 = vmatprep.subr.bf16.mxu1 %v1108_v3 }
  0x24   : > { %1046 = vmatpush3.bf16.msra.mxu0 %v1045_v49 }
  0x25   : > { %1070 = vmatpush3.bf16.msra.mxu1 %v1069_v50  ;;  %1047 = vmatprep.subr.bf16.mxu0 %v1108_v3 }
  0x26   : > { %1071 = vmatprep.subr.bf16.mxu1 %v1108_v3 }
  0x28   : > { %1049 = vmatpush3.bf16.msra.mxu0 %v1048_v55 }
  0x29   : > { %1073 = vmatpush3.bf16.msra.mxu1 %v1072_v56  ;;  %1050 = vmatprep.subr.bf16.mxu0 %v1108_v3 }
  0x2a   : > { %1074 = vmatprep.subr.bf16.mxu1 %v1108_v3 }
  0x2c   : > { %1052 = vmatpush3.bf16.msra.mxu0 %v1051_v61 }
  0x2d   : > { %1076 = vmatpush3.bf16.msra.mxu1 %v1075_v62  ;;  %1053 = vmatprep.subr.bf16.mxu0 %v1108_v3 }
  0x2e   : > { %1077 = vmatprep.subr.bf16.mxu1 %v1108_v3 }
  0x30   : > { %1055 = vmatpush3.bf16.msra.mxu0 %v1054_v2 }
  0x31   : > { %1079 = vmatpush3.bf16.msra.mxu1 %v1078_v5  ;;  %1056 = vmatprep.subr.bf16.mxu0 %v1108_v3 }
  0x32   : > { %1080 = vmatprep.subr.bf16.mxu1 %v1108_v3 }
  0x34   : > { %1058 = vmatpush3.bf16.msra.mxu0 %v1057_v8 }
  0x35   : > { %1082 = vmatpush3.bf16.msra.mxu1 %v1081_v12  ;;  %1083 = vmatprep.subr.bf16.mxu0 %v1108_v3 }
  0xea   : > { %v407_v13 = vpop.f32.mrb[0].mxu0 }
  0xeb   : > { %v485_v14 = vpop.f32.mrb[0].mxu1  ;;  %v910_v16 = vpop.f32.mrb[1].mxu0 }
  0xec   : > { %v489_v17 = vmax.f32 %v407_v13, %v485_v14  ;;  %v929_v18 = vpop.f32.mrb[1].mxu1 }
  0xee   : > { %v497_v19 = vadd.f32 %v829_v15, %v489_v17 }
  0xf0   : > { %v498_v20 = vmax.f32 %v497_v19, 0.0 }
  0xf2   : > { %963 = vmatmul.mubr.f32.vlgmr.msra.gmra.mrb[2].mxu0 %v498_v20  ;;  %998 = vmatmul.mubr.f32.vlgmr.msra.gmra.mrb[2].mxu1 %v498_v20 }
  0xf3   : > { %1008 = vmatprep.mubr.msk.f32.mxu0 %vm1109_vm0, %v1110_v11  ;;  %1085 = vmatpush3.bf16.msra.mxu0 %v1084_v23  ;;  %v684_v11 = vld [vmem:[%s1403_s7 + $0x18] sm:$0xff] }
  0xf4   : > { %1086 = vmatprep.subr.bf16.mxu0 %v1108_v3  ;;  %v1087_v25 = vpack.c.bf16 %v684_v11, %v683_v24 }
  0xf7   : > { %1088 = vmatpush3.bf16.msra.mxu0 %v1087_v25 }
 0x1c5   : > { %v581_v26 = vpop.f32.mrb[2].mxu0  ;;  %v667_v27 = vpop.f32.mrb[2].mxu1 }
 0x1c6   : > { %v671_v29 = vmax.f32 %v581_v26, %v667_v27  ;;  %v964_v30 = vpop.f32.mrb[3].mxu0  ;;  %v999_v3 = vpop.f32.mrb[3].mxu1 }
 0x1c8   : > { %v679_v31 = vadd.f32 %v830_v28, %v671_v29 }
 0x1ca   : > { %v680_v32 = vmax.f32 %v679_v31, 0.0 }
 0x1cc   : > { %1009 = vmatmul.mubr.msk.f32.vlgmr.msra.gmra.mrb[4].mxu0 %vm692_vm2, %v680_v32 }
 0x29f   : > { %v762_v34 = vpop.f32.mrb[4].mxu0 }
 0x2a0   : > { %v763_v35 = vadd.f32 %v831_v33, %v762_v34  ;;  %v1010_v36 = vpop.f32.mrb[5].mxu0 }
 0x2a2   : > { %766 = vst [vmem:[%s327_s18] sm:$0xff] %v763_v35 }
 0x2a3 PF: > { %s19_s30 = sadd.s32 1, %s1106_s30  }
 0x2a4   : > { %p16_p4 = scmp.ge.s32.totalorder %s19_s30, 4  }
 0x2a6   :  { %18 = sbr.rel (!%p16_p4) target bundleno = 1 (0x1), region = 86 }

</bundles_post_ra>
